<compile_context>
chip_gen: v6e
topology: v6e:2x2x1
jax: 0.10.0
libtpu: 0.0.40
codegen_flags: <defaults>
</compile_context>

<pallas_src>
import jax
import jax.numpy as jnp
from jax.experimental import pallas as pl
from jax.experimental.pallas import tpu as pltpu  # noqa: F401  (TPU backend, CompilerParams if needed)

FEATURE = 8    # feature_size (dt.shape[1] in the original script) -- small synthetic value
HIDDEN = 32    # hidden (512 in the original) -- small synthetic value
BATCH = 2
SEQ = 8

# Gate order inside the fused 4H dimension: [i, f, o, g].
# (PyTorch parameter order is [i, f, g, o]; putting the three sigmoid gates first lets
#  one sigmoid handle a contiguous (B, 3H) slice.)
_GATE_PERM = (0, 1, 3, 2)


def _water_kernel(xproj_ref, whh0_ref, w1_ref, b1_ref, wlin_ref, blin_ref, out_ref):
    """Sequential 2-layer LSTM recurrence + final Linear, entirely in VMEM.

    xproj_ref: (T, B, 4H)  layer-0 input projection x @ Wih0 + b0 (precomputed)
    whh0_ref : (H, 4H)     layer-0 recurrent weights, gate-fused [i,f,o,g]
    w1_ref   : (2H, 4H)    layer-1 [Wih1; Whh1] stacked vertically, gate-fused
    b1_ref   : (1, 4H)     layer-1 combined bias (b_ih + b_hh)
    wlin_ref : (H, F)      final Linear weight (pre-transposed)
    blin_ref : (1, F)      final Linear bias
    out_ref  : (B, F)      output for the last timestep
    """
    T, B, _ = xproj_ref.shape
    H = whh0_ref.shape[0]

    # Loop-invariant weights: load once, reuse across all T steps.
    whh0 = whh0_ref[...]
    w1 = w1_ref[...]
    b1 = b1_ref[...]

    def activate(gates, c):
        # gates: (B, 4H) laid out as [i, f, o, g]
        sig = jax.nn.sigmoid(gates[:, :3 * H])        # one EUP pass for i, f, o
        i = sig[:, :H]
        f = sig[:, H:2 * H]
        o = sig[:, 2 * H:3 * H]
        g = jnp.tanh(gates[:, 3 * H:])
        c_new = f * c + i * g
        h_new = o * jnp.tanh(c_new)
        return h_new, c_new

    def step(t, carry):
        h0, c0, h1, c1 = carry
        # Layer 0: input projection already hoisted; one (B,H)@(H,4H) matmul.
        gates0 = xproj_ref[t] + jnp.dot(h0, whh0, preferred_element_type=jnp.float32)
        h0, c0 = activate(gates0, c0)
        # Layer 1: single (B,2H)@(2H,4H) matmul (x-proj and h-proj accumulate in the MXU).
        xh = jnp.concatenate([h0, h1], axis=-1)
        gates1 = jnp.dot(xh, w1, preferred_element_type=jnp.float32) + b1
        h1, c1 = activate(gates1, c1)
        return h0, c0, h1, c1

    zeros = jnp.zeros((B, H), jnp.float32)
    _, _, h1, _ = jax.lax.fori_loop(0, T, step, (zeros, zeros, zeros, zeros))

    # Linear on the last timestep only (self.linear(x[:, -1:, :]) in the PyTorch module).
    y = jnp.dot(h1, wlin_ref[...], preferred_element_type=jnp.float32) + blin_ref[...]
    out_ref[...] = y.astype(out_ref.dtype)


def prepare_kernel_weights(params, weight_dtype=jnp.float32):
    """Restack per-gate PyTorch-layout params into the fused kernel layout.

    weight_dtype: f32 here (tight check; v5e activations must stay f32 anyway);
    bf16 is recommended on v6e/v7x at H=512 (halves weight VMEM, bf16 MXU rate),
    with accumulation kept f32 via preferred_element_type.
    """
    def stack_gates(w):               # (4, in, H) -> (in, 4H), gate order [i, f, o, g]
        return jnp.concatenate([w[k] for k in _GATE_PERM], axis=-1)

    wih0 = stack_gates(params["wih0"])                                       # (F, 4H)
    b0 = jnp.concatenate([params["b0"][k] for k in _GATE_PERM], axis=-1)     # (1, 4H)
    whh0 = stack_gates(params["whh0"])                                       # (H, 4H)
    w1 = jnp.concatenate(
        [stack_gates(params["wih1"]), stack_gates(params["whh1"])], axis=0)  # (2H, 4H)
    b1 = jnp.concatenate([params["b1"][k] for k in _GATE_PERM], axis=-1)     # (1, 4H)

    return {
        "wih0": wih0.astype(jnp.float32),   # used in the wrapper pre-pass
        "b0": b0.astype(jnp.float32),
        "whh0": whh0.astype(weight_dtype),
        "w1": w1.astype(weight_dtype),
        "b1": b1.astype(jnp.float32),
        "wlin": params["wlin"].astype(weight_dtype),
        "blin": params["blin"].astype(jnp.float32),
    }


def water_model_forward(x, params, weight_dtype=jnp.float32):
    """x: (B, T, F) batch-first float32, as in the PyTorch module. Returns (B, 1, F)."""
    B, T, F = x.shape
    kw = prepare_kernel_weights(params, weight_dtype)
    H = kw["whh0"].shape[0]

    # Time-major; pad batch up to a multiple of 8 sublanes (padded rows are dropped).
    Bp = max(8, -(-B // 8) * 8)
    xt = jnp.transpose(x, (1, 0, 2)).astype(jnp.float32)          # (T, B, F)
    if Bp != B:
        xt = jnp.pad(xt, ((0, 0), (0, Bp - B), (0, 0)))

    # Hoisted layer-0 input projection: one large time-independent matmul over all
    # T timesteps, so only the recurrent h @ Whh0 matmul remains in the serial loop.
    xproj = jnp.einsum("tbf,fh->tbh", xt, kw["wih0"]) + kw["b0"]  # (T, Bp, 4H) f32

    # TODO(synk): for very long sequences, chunk T with a 1-D "arbitrary" grid and
    # carry h/c in VMEM scratch instead of holding all of xproj in VMEM at once.
    out = pl.pallas_call(
        _water_kernel,
        out_shape=jax.ShapeDtypeStruct((Bp, F), jnp.float32),
    )(xproj, kw["whh0"], kw["w1"], kw["b1"], kw["wlin"], kw["blin"])

    return out[:B][:, None, :]                                    # (B, 1, F)


def init_params(key, feature, hidden):
    """Deterministic synthetic init mimicking PyTorch uniform(-1/sqrt(H), 1/sqrt(H)).

    PyTorch-like per-gate layout (gate order [i, f, g, o]); the kernel layout is
    produced by prepare_kernel_weights.
    """
    ks = jax.random.split(key, 10)
    k = 1.0 / float(jnp.sqrt(jnp.float32(hidden)))

    def u(kk, shape, bound):
        return jax.random.uniform(kk, shape, jnp.float32, -bound, bound)

    return {
        "wih0": u(ks[0], (4, feature, hidden), k),
        "whh0": u(ks[1], (4, hidden, hidden), k),
        "b0":   u(ks[2], (4, 1, hidden), k) + u(ks[3], (4, 1, hidden), k),  # b_ih + b_hh
        "wih1": u(ks[4], (4, hidden, hidden), k),
        "whh1": u(ks[5], (4, hidden, hidden), k),
        "b1":   u(ks[6], (4, 1, hidden), k) + u(ks[7], (4, 1, hidden), k),
        "wlin": u(ks[8], (hidden, feature), k),   # Linear(hidden -> feature), pre-transposed
        "blin": u(ks[9], (1, feature), k),
    }


def reference_forward(x, p):
    """Pure-JAX reference with identical semantics (PyTorch gate order), for checking."""
    def run_layer(seq, wih, whh, b):
        B = seq.shape[1]
        H = whh.shape[-1]

        def step(carry, x_t):
            h, c = carry

            def gate(kk):
                return x_t @ wih[kk] + h @ whh[kk] + b[kk]

            i = jax.nn.sigmoid(gate(0))
            f = jax.nn.sigmoid(gate(1))
            g = jnp.tanh(gate(2))
            o = jax.nn.sigmoid(gate(3))
            c = f * c + i * g
            h = o * jnp.tanh(c)
            return (h, c), h

        init = (jnp.zeros((B, H), jnp.float32), jnp.zeros((B, H), jnp.float32))
        _, hs = jax.lax.scan(step, init, seq)
        return hs

    seq = jnp.transpose(x, (1, 0, 2))
    h1 = run_layer(seq, p["wih0"], p["whh0"], p["b0"])
    h2 = run_layer(h1, p["wih1"], p["whh1"], p["b1"])
    y = h2[-1] @ p["wlin"] + p["blin"]
    return y[:, None, :]


if __name__ == "__main__":
    key = jax.random.PRNGKey(0)
    kx, kp = jax.random.split(key)
    x = jax.random.normal(kx, (BATCH, SEQ, FEATURE), jnp.float32)
    params = init_params(kp, FEATURE, HIDDEN)

    out = water_model_forward(x, params)
    out = jax.block_until_ready(out)

    ref = reference_forward(x, params)
    assert out.shape == (BATCH, 1, FEATURE), out.shape
    assert jnp.allclose(out, ref, atol=1e-5, rtol=1e-5), (out, ref)
    print("KERNEL_OK")
</pallas_src>

<mosaic_0001>
module attributes {stable_mosaic.version = 11 : i64} {
  func.func @_water_kernel(%arg0: memref<8x8x128xf32, #tpu.memory_space<vmem>>, %arg1: memref<32x128xf32, #tpu.memory_space<vmem>>, %arg2: memref<64x128xf32, #tpu.memory_space<vmem>>, %arg3: memref<1x128xf32, #tpu.memory_space<vmem>>, %arg4: memref<32x8xf32, #tpu.memory_space<vmem>>, %arg5: memref<1x8xf32, #tpu.memory_space<vmem>>, %arg6: memref<8x8xf32, #tpu.memory_space<vmem>>) attributes {dimension_semantics = [], scalar_prefetch = 0 : i64, scratch_operands = 0 : i64, tpu.core_type = #tpu.core_type<tc>} {
    %c0 = arith.constant 0 : index
    %c0_0 = arith.constant 0 : index
    %0 = vector.load %arg1[%c0, %c0_0] : memref<32x128xf32, #tpu.memory_space<vmem>>, vector<32x128xf32>
    %c0_1 = arith.constant 0 : index
    %c0_2 = arith.constant 0 : index
    %1 = vector.load %arg2[%c0_1, %c0_2] : memref<64x128xf32, #tpu.memory_space<vmem>>, vector<64x128xf32>
    %c0_3 = arith.constant 0 : index
    %c0_4 = arith.constant 0 : index
    %2 = vector.load %arg3[%c0_3, %c0_4] : memref<1x128xf32, #tpu.memory_space<vmem>>, vector<1x128xf32>
    %cst = arith.constant 0.000000e+00 : f32
    %3 = vector.broadcast %cst : f32 to vector<8x32xf32>
    %c0_i32 = arith.constant 0 : i32
    %c8_i32 = arith.constant 8 : i32
    %4 = arith.addi %c0_i32, %c8_i32 : i32
    %c1_i32 = arith.constant 1 : i32
    %5:4 = scf.for %arg7 = %c0_i32 to %4 step %c1_i32 iter_args(%arg8 = %3, %arg9 = %3, %arg10 = %3, %arg11 = %3) -> (vector<8x32xf32>, vector<8x32xf32>, vector<8x32xf32>, vector<8x32xf32>)  : i32 {
      %12 = arith.index_cast %arg7 : i32 to index
      %c0_13 = arith.constant 0 : index
      %c0_14 = arith.constant 0 : index
      %13 = vector.load %arg0[%12, %c0_13, %c0_14] : memref<8x8x128xf32, #tpu.memory_space<vmem>>, vector<1x8x128xf32>
      %14 = vector.shape_cast %13 : vector<1x8x128xf32> to vector<8x128xf32>
      %cst_15 = arith.constant dense<0.000000e+00> : vector<8x128xf32>
      %15 = tpu.matmul %arg8, %0, %cst_15 {dimension_numbers = #tpu.dot_dimension_numbers<[1], [0], [0], [1], [0, 0, 1, 1], [], []>} : vector<8x32xf32>, vector<32x128xf32>, vector<8x128xf32> -> vector<8x128xf32>
      %16 = arith.addf %14, %15 : vector<8x128xf32>
      %17 = vector.extract_strided_slice %16 {offsets = [0, 0], sizes = [8, 96], strides = [1, 1]} : vector<8x128xf32> to vector<8x96xf32>
      %18 = arith.negf %17 : vector<8x96xf32>
      %19 = math.exp %18 : vector<8x96xf32>
      %cst_16 = arith.constant 1.000000e+00 : f32
      %20 = vector.broadcast %cst_16 : f32 to vector<8x96xf32>
      %21 = arith.addf %20, %19 : vector<8x96xf32>
      %22 = arith.divf %20, %21 : vector<8x96xf32>
      %23 = vector.extract_strided_slice %22 {offsets = [0, 0], sizes = [8, 32], strides = [1, 1]} : vector<8x96xf32> to vector<8x32xf32>
      %24 = vector.extract_strided_slice %22 {offsets = [0, 32], sizes = [8, 32], strides = [1, 1]} : vector<8x96xf32> to vector<8x32xf32>
      %25 = vector.extract_strided_slice %22 {offsets = [0, 64], sizes = [8, 32], strides = [1, 1]} : vector<8x96xf32> to vector<8x32xf32>
      %26 = vector.extract_strided_slice %16 {offsets = [0, 96], sizes = [8, 32], strides = [1, 1]} : vector<8x128xf32> to vector<8x32xf32>
      %27 = math.tanh %26 : vector<8x32xf32>
      %28 = arith.mulf %24, %arg9 : vector<8x32xf32>
      %29 = arith.mulf %23, %27 : vector<8x32xf32>
      %30 = arith.addf %28, %29 : vector<8x32xf32>
      %31 = math.tanh %30 : vector<8x32xf32>
      %32 = arith.mulf %25, %31 : vector<8x32xf32>
      %33 = tpu.concatenate %32, %arg10 in 1 : vector<8x32xf32>, vector<8x32xf32> -> vector<8x64xf32>
      %cst_17 = arith.constant dense<0.000000e+00> : vector<8x128xf32>
      %34 = tpu.matmul %33, %1, %cst_17 {dimension_numbers = #tpu.dot_dimension_numbers<[1], [0], [0], [1], [0, 0, 1, 1], [], []>} : vector<8x64xf32>, vector<64x128xf32>, vector<8x128xf32> -> vector<8x128xf32>
      %35 = vector.broadcast %2 : vector<1x128xf32> to vector<8x128xf32>
      %36 = arith.addf %34, %35 : vector<8x128xf32>
      %37 = vector.extract_strided_slice %36 {offsets = [0, 0], sizes = [8, 96], strides = [1, 1]} : vector<8x128xf32> to vector<8x96xf32>
      %38 = arith.negf %37 : vector<8x96xf32>
      %39 = math.exp %38 : vector<8x96xf32>
      %cst_18 = arith.constant 1.000000e+00 : f32
      %40 = vector.broadcast %cst_18 : f32 to vector<8x96xf32>
      %41 = arith.addf %40, %39 : vector<8x96xf32>
      %42 = arith.divf %40, %41 : vector<8x96xf32>
      %43 = vector.extract_strided_slice %42 {offsets = [0, 0], sizes = [8, 32], strides = [1, 1]} : vector<8x96xf32> to vector<8x32xf32>
      %44 = vector.extract_strided_slice %42 {offsets = [0, 32], sizes = [8, 32], strides = [1, 1]} : vector<8x96xf32> to vector<8x32xf32>
      %45 = vector.extract_strided_slice %42 {offsets = [0, 64], sizes = [8, 32], strides = [1, 1]} : vector<8x96xf32> to vector<8x32xf32>
      %46 = vector.extract_strided_slice %36 {offsets = [0, 96], sizes = [8, 32], strides = [1, 1]} : vector<8x128xf32> to vector<8x32xf32>
      %47 = math.tanh %46 : vector<8x32xf32>
      %48 = arith.mulf %44, %arg11 : vector<8x32xf32>
      %49 = arith.mulf %43, %47 : vector<8x32xf32>
      %50 = arith.addf %48, %49 : vector<8x32xf32>
      %51 = math.tanh %50 : vector<8x32xf32>
      %52 = arith.mulf %45, %51 : vector<8x32xf32>
      scf.yield %32, %30, %52, %50 : vector<8x32xf32>, vector<8x32xf32>, vector<8x32xf32>, vector<8x32xf32>
    }
    %c8_i32_5 = arith.constant 8 : i32
    %c0_6 = arith.constant 0 : index
    %c0_7 = arith.constant 0 : index
    %6 = vector.load %arg4[%c0_6, %c0_7] : memref<32x8xf32, #tpu.memory_space<vmem>>, vector<32x8xf32>
    %cst_8 = arith.constant dense<0.000000e+00> : vector<8x8xf32>
    %7 = tpu.matmul %5#2, %6, %cst_8 {dimension_numbers = #tpu.dot_dimension_numbers<[1], [0], [0], [1], [0, 0, 1, 1], [], []>} : vector<8x32xf32>, vector<32x8xf32>, vector<8x8xf32> -> vector<8x8xf32>
    %c0_9 = arith.constant 0 : index
    %c0_10 = arith.constant 0 : index
    %8 = vector.load %arg5[%c0_9, %c0_10] : memref<1x8xf32, #tpu.memory_space<vmem>>, vector<1x8xf32>
    %9 = vector.broadcast %8 : vector<1x8xf32> to vector<8x8xf32>
    %10 = arith.addf %7, %9 : vector<8x8xf32>
    %c0_11 = arith.constant 0 : index
    %c0_12 = arith.constant 0 : index
    %11 = vector.load %arg6[%c0_11, %c0_12] : memref<8x8xf32, #tpu.memory_space<vmem>>, vector<8x8xf32>
    tpu.vector_store %arg6[%c0_11, %c0_12], %10 {strides = array<i32>} : memref<8x8xf32, #tpu.memory_space<vmem>>, vector<8x8xf32>,
    return
  }
}

</mosaic_0001>

<bundles_post_ra>
// kernel: tpu_custom_call.1
= control target key start
LH: loop header
LB: loop body
LE: loop exit
PB: predicated region body
PF: predicated region fallthrough
CT: control target
= control target key end

     0   :  { %11 = vsyncpa [#allocation3], 0  ;;  %s830_s0 = inlined_call_operand.hbm [shape: f32[8,8,128], index: 0, kind: input, shape index: {}]   ;;  %s831_s1 = inlined_call_operand.vmem [shape: f32[32,128], index: 1, kind: input, shape index: {}]   ;;  %s832_s2 = inlined_call_operand.hbm [shape: f32[64,128], index: 2, kind: input, shape index: {}]   ;;  %s833_s3 = inlined_call_operand.vmem [shape: f32[1,128], index: 3, kind: input, shape index: {}]   ;;  %s834_s4 = inlined_call_operand.vmem [shape: f32[32,8], index: 4, kind: input, shape index: {}]   ;;  %s835_s5 = inlined_call_operand.vmem [shape: f32[1,8], index: 5, kind: input, shape index: {}]   ;;  %s836_s6 = inlined_call_operand.hbm [shape: f32[8,8], index: 6, kind: output, shape index: {}]  }
   0x1   :  { %12 = vsyncpa [#allocation6], 0 }
   0x2   :  { %13 = vsyncpa [#allocation4], 0  ;;  %s659_s21 = smov [#allocation2]  }
   0x3   :  { %s19_s22 = sshll.u32 %s659_s21, 4  ;;  %s20_s22 = int_to_ptr.vmem [resolvable:$true] %s19_s22 }
   0x4   :  { %s561_s23 = scalar_lea.vmem %s20_s22, 1024  ;;  %p566_p1 = scmp.lt.s32.totalorder %s20_s22, %s20_s22 }
   0x5   :  { %p562_p0 = scmp.ne.s32.totalorder %s20_s22, %s561_s23  ;;  %p567_p2 = scmp.lt.s32.totalorder %s561_s23, %s561_s23 }
   0x7   :  { %p568_p3 = por %p567_p2, %p566_p1 }
   0x9   :  { %p569_p4 = pnand %p568_p3, %p562_p0 }
   0xb   :  { %572 = shalt.err (!%p569_p4)
}
   0xc   :  { %s660_s24 = smov 128   ;;  %s661_s25 = smov 8  }
   0xd   :  { %25 = dma.hbm_to_vmem [thread:$0]  %s830_s0, 1024, %s20_s22, [#allocation3], %s660_s24, %s660_s24, %s661_s25  }
   0xe   :  { %s662_s28 = smov [#allocation5]  }
   0xf   :  { %s33_s29 = sshll.u32 %s662_s28, 4  ;;  %s34_s29 = int_to_ptr.vmem [resolvable:$true] %s33_s29 }
  0x10   :  { %s581_s30 = scalar_lea.vmem %s34_s29, 1024  ;;  %p586_p6 = scmp.lt.s32.totalorder %s34_s29, %s34_s29 }
  0x11   :  { %p582_p5 = scmp.ne.s32.totalorder %s34_s29, %s581_s30  ;;  %p587_p7 = scmp.lt.s32.totalorder %s581_s30, %s581_s30 }
  0x13   :  { %p588_p8 = por %p587_p7, %p586_p6 }
  0x15   :  { %p589_p9 = pnand %p588_p8, %p582_p5 }
  0x17   :  { %592 = shalt.err (!%p589_p9)
}
  0x18   :  { %39 = dma.hbm_to_vmem [thread:$0]  %s832_s2, 1024, %s34_s29, [#allocation6], %s660_s24, %s660_s24, %s661_s25  }
  0x19   :  { %633 = dma.done.wait [#allocation3], 1024  }
  0x1a   :  { %634 = vsyncadd [#allocation3], 4294966272 }
  0x1b   :  { %635 = dma.done.wait [#allocation6], 1024  }
  0x1c   :  { %636 = vsyncadd [#allocation6], 4294966272  ;;  %v716_v0 = vld [vmem:[%s831_s1] sm:$0xff]  ;;  %v721_v1 = vld [vmem:[%s831_s1 + $0x8] sm:$0xff]  ;;  %v754_v13 = vmov 0.0   ;;  %v756_v14 = vmov 0.0  }
  0x1d   :  { %v726_v2 = vld [vmem:[%s831_s1 + $0x10] sm:$0xff]  ;;  %v731_v3 = vld [vmem:[%s831_s1 + $0x18] sm:$0xff]  ;;  %v733_v4 = vld [vmem:[#allocation5] sm:$0xff]  ;;  %v758_v15 = vmov 0.0   ;;  %v760_v16 = vmov 0.0   ;;  %s762_s1 = smov 0  }
  0x1e   :  { %v735_v5 = vld [vmem:[#allocation5 + $0x8] sm:$0xff]  ;;  %v737_v6 = vld [vmem:[#allocation5 + $0x10] sm:$0xff]  ;;  %v739_v7 = vld [vmem:[#allocation5 + $0x18] sm:$0xff] }
  0x1f   :  { %v741_v8 = vld [vmem:[#allocation5 + $0x20] sm:$0xff]  ;;  %v743_v9 = vld [vmem:[#allocation5 + $0x28] sm:$0xff]  ;;  %v745_v10 = vld [vmem:[#allocation5 + $0x30] sm:$0xff] }
  0x20   :  { %v747_v11 = vld [vmem:[#allocation5 + $0x38] sm:$0xff]  ;;  %v752_v12 = vld [vmem:[%s833_s3] ss:$0 sm:$0xff] }
  0x21 LB: > { %v663_v17 = vmov 0.0   ;;  %vm664_vm0 = vmmov 0   ;;  %s665_s3 = smov 64   ;;  %vm81_vm1 = vcmask 261120   ;;  %s416_s17 = sshll.u32 %s657_s1, 3  ;;  %vm194_vm2 = vcmask 523264   ;;  %s657_s1 = sphi %s762_s1, %s70_s1   ;;  %v653_v16 = vphi %v760_v16, %v178_v16   ;;  %v649_v15 = vphi %v758_v15, %v172_v15   ;;  %v645_v14 = vphi %v756_v14, %v837_v14   ;;  %v641_v13 = vphi %v754_v13, %v285_v13  }
  0x22   : > { %443 = vmatprep.subr.mxu0 %v663_v17  ;;  %451 = vmatprep.mubr.msk.f32.mxu0 %vm664_vm0, %v663_v17  ;;  %s76_s18 = scalar_lea.vmem [#allocation2], %s416_s17  ;;  %s666_s19 = smov 32  }
  0x23   : > { %79 = vrot.lane.b32.xlu0 %v653_v16, %s665_s3  ;;  %444 = vmatpush3.msra.mxu0 %v731_v3  ;;  %v77_v19 = vld [vmem:[%s76_s18] sm:$0xff]  ;;  %s667_s20 = smov 96   ;;  %s70_s1 = sadd.s32 1, %s657_s1  }
  0x24   : > { %445 = vmatprep.subr.mxu0 %v663_v17  ;;  %454 = vmatprep.subr.mxu1 %v663_v17  ;;  %p67_p10 = scmp.ge.s32.totalorder %s70_s1, 8  }
  0x25   : > { %446 = vmatpush3.msra.mxu0 %v726_v2  ;;  %455 = vmatpush3.msra.mxu1 %v747_v11  ;;  %v295_v52 = vld [vmem:[%s834_s4 + $0x18] sm:$0xff] (%p67_p10)  ;;  %s668_s23 = smov (%p67_p10), 64   ;;  %v669_v53 = vmov (%p67_p10), 0.0   ;;  %v294_v54 = vld [vmem:[%s834_s4 + $0x10] sm:$0xff] (%p67_p10)  ;;  %vm670_vm3 = vmmov (%p67_p10), 0   ;;  %v293_v55 = vld [vmem:[%s834_s4 + $0x8] sm:$0xff] (%p67_p10) }
  0x26   : > { %447 = vmatprep.subr.mxu0 %v663_v17  ;;  %456 = vmatprep.subr.mxu1 %v663_v17  ;;  %v292_v56 = vld [vmem:[%s834_s4] sm:$0xff] (%p67_p10)  ;;  %s671_s8 = smov (%p67_p10), [#allocation7]   ;;  %vm379_vm4 = vcmask (%p67_p10), 64512  }
  0x27   : > { %448 = vmatpush3.msra.mxu0 %v721_v1  ;;  %457 = vmatpush3.msra.mxu1 %v745_v10  ;;  %v422_v58 = vld [vmem:[%s835_s5] ss:$0 sm:$0xff] (%p67_p10)  ;;  %s387_s9 = sshll.u32 (%p67_p10), %s671_s8, 4  ;;  %s388_s9 = int_to_ptr.vmem [resolvable:$true] %s387_s9 }
  0x28   : > { %449 = vmatprep.subr.mxu0 %v663_v17  ;;  %458 = vmatprep.subr.mxu1 %v663_v17  ;;  %s593_s0 = scalar_lea.vmem (%p67_p10), %s388_s9, 128  ;;  %p598_p12 = scmp.lt.s32.totalorder (%p67_p10), %s388_s9, %s388_s9 }
  0x29   : > { %450 = vmatpush3.msra.mxu0 %v716_v0  ;;  %459 = vmatpush3.msra.mxu1 %v743_v9  ;;  %p594_p11 = scmp.ne.s32.totalorder (%p67_p10), %s388_s9, %s593_s0  ;;  %p599_p13 = scmp.lt.s32.totalorder (%p67_p10), %s593_s0, %s593_s0 }
  0x2a   : > { %460 = vmatprep.subr.mxu1 %v663_v17  ;;  %470 = vmatprep.mubr.msk.f32.mxu1 %vm664_vm0, %v663_v17 }
  0x2b   : > { %461 = vmatpush3.msra.mxu1 %v741_v8  ;;  %473 = vmatprep.subr.mxu0 (%p67_p10), %v669_v53  ;;  %p600_p0 = por (%p67_p10), %p599_p13, %p598_p12 }
  0x2c   : > { %462 = vmatprep.subr.mxu1 %v663_v17 }
  0x2d   : > { %463 = vmatpush3.msra.mxu1 %v739_v7  ;;  %p601_p1 = pnand (%p67_p10), %p600_p0, %p594_p11 }
  0x2e   : > { %464 = vmatprep.subr.mxu1 %v663_v17 }
  0x2f   : > { %465 = vmatpush3.msra.mxu1 %v737_v6 }
  0x30   : > { %466 = vmatprep.subr.mxu1 %v663_v17 }
  0x31   : > { %467 = vmatpush3.msra.mxu1 %v735_v5 }
  0x32   : > { %468 = vmatprep.subr.mxu1 %v663_v17 }
  0x33   : > { %469 = vmatpush3.msra.mxu1 %v733_v4 }
  0x95   : > { %v80_v18 = vpop.permute.xlu0 %79 }
  0x96   : > { %452 = vmatmul.mubr.msk.f32.vlgmr.msra.gmra.mxu0 %vm81_vm1, %v80_v18 }
  0x97   :  { %474 = vmatpush3.msra.mxu0 (%p67_p10), %v295_v52  ;;  %481 = vmatprep.mubr.msk.f32.mxu0 (%p67_p10), %vm670_vm3, %v669_v53 }
  0x98   :  { %475 = vmatprep.subr.mxu0 (%p67_p10), %v669_v53 }
  0x99   :  { %476 = vmatpush3.msra.mxu0 (%p67_p10), %v294_v54 }
  0x9a   :  { %477 = vmatprep.subr.mxu0 (%p67_p10), %v669_v53 }
  0x9b   :  { %478 = vmatpush3.msra.mxu0 (%p67_p10), %v293_v55 }
  0x9c   :  { %479 = vmatprep.subr.mxu0 (%p67_p10), %v669_v53 }
  0x9d   :  { %480 = vmatpush3.msra.mxu0 (%p67_p10), %v292_v56 }
 0x156   : > { %v150_v20 = vpop.f32.mrf.mxu0 }
 0x157   : > { %v154_v21 = vadd.f32 %v150_v20, %v77_v19 }
 0x158   : > { %v453_v22 = vpop.f32.mrf.mxu0 }
 0x159   : > { %537 = vtanh.f32 %v154_v21  ;;  %v418_v24 = vmul.f32 -1.442695, %v154_v21 }
 0x15b   : > { %539 = vpow2.f32 %v418_v24 }
 0x166   : > { %v538_v23 = vpop.eup %537 }
 0x167   : > { %164 = vrot.lane.b32.xlu0 %v538_v23, %s666_s19 }
 0x168   : > { %v540_v25 = vpop.eup %539 }
 0x169   : > { %v158_v26 = vadd.f32 1.0, %v540_v25 }
 0x16b   : > { %541 = vrcp.f32 %v158_v26 }
 0x178   : > { %v542_v27 = vpop.eup %541 }
 0x179   : > { %v162_v30 = vmul.f32 %v649_v15, %v542_v27 }
 0x1d9   : > { %v165_v28 = vpop.permute.xlu0 %164 }
 0x1da   : > { %v167_v29 = vmul.f32 %v542_v27, %v165_v28 }
 0x1dc   : > { %169 = vrot.lane.b32.xlu1 %v167_v29, %s666_s19 }
 0x24e   : > { %v170_v31 = vpop.permute.xlu1 %169 }
 0x24f   : > { %v172_v15 = vadd.f32 %v170_v31, %v162_v30  }
 0x251   : > { %543 = vtanh.f32 %v172_v15 }
 0x25e   : > { %v544_v32 = vpop.eup %543 }
 0x25f   : > { %175 = vrot.lane.b32.xlu1 %v544_v32, %s666_s19 }
 0x263   : > { %184 = vrot.lane.b32.xlu1 %v645_v14, %s667_s20 }
 0x2d1   : > { %v176_v33 = vpop.permute.xlu1 %175 }
 0x2d2   : > { %v178_v16 = vmul.f32 %v542_v27, %v176_v33  }
 0x2d4   : > { %180 = vrot.lane.b32.xlu0 %v178_v16, %s665_s3 }
 0x2d5   : > { %v185_v34 = vpop.permute.xlu1 %184 }
 0x346   : > { %v181_v35 = vpop.permute.xlu0 %180 }
 0x347   : > { %v187_v36 = vsel %vm81_vm1, %v181_v35, %v185_v34 }
 0x348   : > { %471 = vmatmul.mubr.msk.f32.vlgmr.msra.gmra.mxu1 %vm194_vm2, %v187_v36 }
 0x408   : > { %v264_v37 = vpop.f32.mrf.mxu1 }
 0x409   : > { %v265_v38 = vadd.f32 %v752_v12, %v264_v37 }
 0x40a   : > { %v472_v39 = vpop.f32.mrf.mxu1 }
 0x40b   : > { %545 = vtanh.f32 %v265_v38  ;;  %v421_v41 = vmul.f32 -1.442695, %v265_v38 }
 0x40d   : > { %547 = vpow2.f32 %v421_v41 }
 0x418   : > { %v546_v40 = vpop.eup %545 }
 0x419   : > { %277 = vrot.lane.b32.xlu0 %v546_v40, %s666_s19 }
 0x41a   : > { %v548_v42 = vpop.eup %547 }
 0x41b   : > { %v271_v43 = vadd.f32 1.0, %v548_v42 }
 0x41d   : > { %549 = vrcp.f32 %v271_v43 }
 0x42a   : > { %v550_v44 = vpop.eup %549 }
 0x42b   : > { %v275_v47 = vmul.f32 %v641_v13, %v550_v44 }
 0x48b   : > { %v278_v45 = vpop.permute.xlu0 %277 }
 0x48c   : > { %v280_v46 = vmul.f32 %v550_v44, %v278_v45 }
 0x48e   : > { %282 = vrot.lane.b32.xlu1 %v280_v46, %s666_s19 }
 0x500   : > { %v283_v48 = vpop.permute.xlu1 %282 }
 0x501   : > { %v285_v13 = vadd.f32 %v283_v48, %v275_v47  }
 0x503   : > { %551 = vtanh.f32 %v285_v13 }
 0x510   : > { %v552_v49 = vpop.eup %551 }
 0x511   : > { %288 = vrot.lane.b32.xlu0 %v552_v49, %s666_s19 }
 0x582   :  { %69 = sbr.rel (!%p67_p10) target bundleno = 33 (0x21), region = 60 }
 0x583   : > { %v289_v50 = vpop.permute.xlu0 %288 }
 0x584   : > { %v291_v51 = vmul.f32 %v550_v44, %v289_v50  }
 0x586   : > { %v837_v14 = vmov %v291_v51  ;;  %304 = vrot.lane.b32.xlu0 (%p67_p10), %v291_v51, %s668_s23 }
 0x5f8   :  { %v305_v57 = vpop.permute.xlu0 %304 }
 0x5f9   :  { %482 = vmatmul.mubr.msk.f32.vlgmr.msra.gmra.mxu0 %vm81_vm1, %v305_v57 }
 0x6b9   :  { %v375_v59 = vpop.f32.mrf.mxu0 }
 0x6ba   :  { %v376_v60 = vadd.f32 %v422_v58, %v375_v59 }
 0x6bb   :  { %v483_v61 = vpop.f32.mrf.mxu0 }
 0x6bc   :  { %380 = vst.msk [vmem:[#allocation7] sm:$0xff] %vm379_vm4, %v376_v60 }
 0x6bd   :  { %604 = shalt.err (!%p601_p1)
}
 0x6be   :  { %390 = dma.vmem_to_hbm [thread:$0]  %s388_s9, 128, %s836_s6, [#allocation4]  }
 0x6bf   :  { %637 = dma.done.wait [#allocation4], 128  }
 0x6c0   :  { %638 = vsyncadd [#allocation4], 4294967168 }
 0x6c1   :  { %394 = vsyncpa [#allocation3], 1 }
 0x6c2   :  { %395 = vsyncpa [#allocation6], 1 }
 0x6c3   :  { %396 = vsyncpa [#allocation4], 1 }

</bundles_post_ra>
